<compile_context>
chip_gen: v7x
topology: tpu7x:2x2x1
jax: 0.10.0
libtpu: 0.0.40
codegen_flags: <defaults>
</compile_context>

<pallas_src>
import jax
import jax.numpy as jnp
from jax.experimental import pallas as pl
from jax.experimental.pallas import tpu as pltpu

IN_CH = 21
OUT_CH = 8


def _conv1x1_sigmoid_small_kernel(w_ref, b_ref, x_ref, o_ref):
    # Single grid step; whole tensors live in VMEM.
    # w_ref: (OUT_CH, IN_CH), b_ref: (OUT_CH, 1),
    # x_ref: (N, IN_CH, M),   o_ref: (N, OUT_CH, M)
    w = w_ref[...]
    b = b_ref[...]
    for n in range(x_ref.shape[0]):          # N is static -> unrolled, no transpose
        acc = jnp.dot(w, x_ref[n], preferred_element_type=jnp.float32) + b
        o_ref[n] = jax.nn.sigmoid(acc).astype(o_ref.dtype)


def _conv1x1_sigmoid_tile_kernel(w_ref, b_ref, x_ref, o_ref):
    # Weight-stationary tile: (8,21) @ (21,tm) with the big M dim on lanes.
    # w_ref: (OUT_CH, IN_CH), b_ref: (OUT_CH, 1),
    # x_ref: (IN_CH, tm),     o_ref: (OUT_CH, tm)
    acc = jnp.dot(w_ref[...], x_ref[...], preferred_element_type=jnp.float32)
    acc = acc + b_ref[...]                   # bias broadcast over lanes
    o_ref[...] = jax.nn.sigmoid(acc).astype(o_ref.dtype)


def _round_up(x, m):
    return ((x + m - 1) // m) * m


def conv1x1_sigmoid(x_nchw, weight, bias, *, tm=32768, small_elems=32768):
    """x_nchw: (N, 21, H, W) f32, weight: (8, 21) (torch layout), bias: (8,)."""
    N, C, H, W = x_nchw.shape
    assert C == IN_CH
    M = H * W

    # Channels-first, spatial-on-lanes view — a pure reshape, no data movement.
    x3 = x_nchw.reshape(N, C, M)
    b2 = bias.reshape(OUT_CH, 1)

    if N * M <= small_elems:
        # Tiny problem: one grid step, everything resident in VMEM
        # (footprint <= N*M*128 bytes <= ~4 MiB at the default threshold).
        out3 = pl.pallas_call(
            _conv1x1_sigmoid_small_kernel,
            out_shape=jax.ShapeDtypeStruct((N, OUT_CH, M), x_nchw.dtype),
            grid_spec=pltpu.PrefetchScalarGridSpec(
                num_scalar_prefetch=0,
                grid=(1,),
                in_specs=[
                    pl.BlockSpec((OUT_CH, IN_CH), lambda i: (0, 0)),
                    pl.BlockSpec((OUT_CH, 1), lambda i: (0, 0)),
                    # Full-array blocks are exempt from the (8,128) constraint.
                    pl.BlockSpec((N, IN_CH, M), lambda i: (0, 0, 0)),
                ],
                out_specs=pl.BlockSpec((N, OUT_CH, M), lambda i: (0, 0, 0)),
            ),
            compiler_params=pltpu.CompilerParams(
                dimension_semantics=("arbitrary",)),
        )(weight, b2, x3)
        return out3.reshape(N, OUT_CH, H, W)

    # ---- Tiled path (large M): grid over (N, m_tiles), ragged edge handled
    # ---- by Pallas edge-block masking — no wrapper pad / slice.
    tm_cap = _round_up(M, 128)
    if N == 1:
        # v7x megacore: make sure the M axis exposes >= 2 parallel tiles.
        tm_cap = min(tm_cap, _round_up(pl.cdiv(M, 2), 128))
    tm = max(128, min(tm, tm_cap))
    m_tiles = pl.cdiv(M, tm)

    # VMEM per TC (double-buffered): (24 + 8) * tm * 4 * 2 bytes
    #   tm=32768 -> ~8.4 MB: fits v5e 16 MiB / v6e 32 MiB / v7x 32 MiB defaults,
    #   so no vmem_limit_bytes override is needed.
    out3 = pl.pallas_call(
        _conv1x1_sigmoid_tile_kernel,
        out_shape=jax.ShapeDtypeStruct((N, OUT_CH, M), x_nchw.dtype),
        grid_spec=pltpu.PrefetchScalarGridSpec(
            num_scalar_prefetch=0,
            grid=(N, m_tiles),
            in_specs=[
                # Weight / bias: constant index_map -> resident, never re-fetched.
                pl.BlockSpec((OUT_CH, IN_CH), lambda n, i: (0, 0)),
                pl.BlockSpec((OUT_CH, 1), lambda n, i: (0, 0)),
                # Input: (IN_CH, tm) with the big M dim lane-dense.
                pl.BlockSpec((pl.Squeezed(), IN_CH, tm), lambda n, i: (n, 0, i)),
            ],
            # Output: (OUT_CH, tm) — lane-dense full-width stores;
            # partial edge tile is masked by Pallas.
            out_specs=pl.BlockSpec((pl.Squeezed(), OUT_CH, tm),
                                   lambda n, i: (n, 0, i)),
        ),
        compiler_params=pltpu.CompilerParams(
            dimension_semantics=("parallel", "parallel")),
    )(weight, b2, x3)

    return out3.reshape(N, OUT_CH, H, W)


def reference(x_nchw, weight, bias):
    # pure-JAX reference of conv2d(21->8, k=1) + sigmoid
    y = jnp.einsum("nchw,oc->nohw", x_nchw, weight) + bias[None, :, None, None]
    return jax.nn.sigmoid(y)


if __name__ == "__main__":
    key = jax.random.PRNGKey(0)
    kx, kw, kb, kx2 = jax.random.split(key, 4)

    # Small shapes consistent with the module: batch=2, in_ch=21, spatial=16x16
    x = jax.random.normal(kx, (2, IN_CH, 16, 16), dtype=jnp.float32)

    # Conv2d(21, 8, 1) params: weight (8,21,1,1)->(8,21), bias (8,)
    bound = 1.0 / (IN_CH ** 0.5)
    weight = jax.random.uniform(kw, (OUT_CH, IN_CH), minval=-bound, maxval=bound,
                                dtype=jnp.float32)
    bias = jax.random.uniform(kb, (OUT_CH,), minval=-bound, maxval=bound,
                              dtype=jnp.float32)

    # Path 1: tiny-shape single-step path.
    out = jax.block_until_ready(conv1x1_sigmoid(x, weight, bias))
    ref = reference(x, weight, bias)
    assert out.shape == (2, OUT_CH, 16, 16)
    assert jnp.allclose(out, ref, atol=1e-5, rtol=1e-5)

    # Path 2: force the tiled path on a small, non-128-divisible spatial extent
    # (M = 16*17 = 272) to exercise ragged edge-block masking + megacore capping.
    x2 = jax.random.normal(kx2, (1, IN_CH, 16, 17), dtype=jnp.float32)
    out2 = jax.block_until_ready(
        conv1x1_sigmoid(x2, weight, bias, tm=128, small_elems=0))
    ref2 = reference(x2, weight, bias)
    assert out2.shape == (1, OUT_CH, 16, 17)
    assert jnp.allclose(out2, ref2, atol=1e-5, rtol=1e-5)

    # NOTE: `self.pos` and `mlp()` are unused in forward(); not part of the hot path.
    print("KERNEL_OK")
</pallas_src>

<mosaic_0001>
module attributes {stable_mosaic.version = 11 : i64} {
  func.func @_conv1x1_sigmoid_small_kernel(%arg0: i32, %arg1: memref<8x21xf32, #tpu.memory_space<vmem>>, %arg2: memref<8x1xf32, #tpu.memory_space<vmem>>, %arg3: memref<2x21x256xf32, #tpu.memory_space<vmem>>, %arg4: memref<2x8x256xf32, #tpu.memory_space<vmem>>) attributes {dimension_semantics = [#tpu.dimension_semantics<arbitrary>], iteration_bounds = array<i64: 1>, scalar_prefetch = 0 : i64, scratch_operands = 0 : i64, tpu.core_type = #tpu.core_type<tc>, window_params = [{pipeline_mode = #tpu.pipeline_mode<synchronous>, transform_indices = @transform_0, window_bounds = array<i64: 8, 21>}, {pipeline_mode = #tpu.pipeline_mode<synchronous>, transform_indices = @transform_1, window_bounds = array<i64: 8, 1>}, {pipeline_mode = #tpu.pipeline_mode<synchronous>, transform_indices = @transform_2, window_bounds = array<i64: 2, 21, 256>}, {pipeline_mode = #tpu.pipeline_mode<synchronous>, transform_indices = @transform_3, window_bounds = array<i64: 2, 8, 256>}]} {
    %c0 = arith.constant 0 : index
    %c0_0 = arith.constant 0 : index
    %0 = vector.load %arg1[%c0, %c0_0] : memref<8x21xf32, #tpu.memory_space<vmem>>, vector<8x21xf32>
    %c0_1 = arith.constant 0 : index
    %c0_2 = arith.constant 0 : index
    %1 = vector.load %arg2[%c0_1, %c0_2] : memref<8x1xf32, #tpu.memory_space<vmem>>, vector<8x1xf32>
    %c0_3 = arith.constant 0 : index
    %c0_4 = arith.constant 0 : index
    %c0_5 = arith.constant 0 : index
    %2 = vector.load %arg3[%c0_3, %c0_4, %c0_5] : memref<2x21x256xf32, #tpu.memory_space<vmem>>, vector<1x21x256xf32>
    %3 = vector.shape_cast %2 : vector<1x21x256xf32> to vector<21x256xf32>
    %cst = arith.constant dense<0.000000e+00> : vector<8x256xf32>
    %4 = tpu.matmul %0, %3, %cst {dimension_numbers = #tpu.dot_dimension_numbers<[1], [0], [0], [1], [0, 0, 1, 1], [], []>} : vector<8x21xf32>, vector<21x256xf32>, vector<8x256xf32> -> vector<8x256xf32>
    %5 = vector.broadcast %1 : vector<8x1xf32> to vector<8x256xf32>
    %6 = arith.addf %4, %5 : vector<8x256xf32>
    %7 = arith.negf %6 : vector<8x256xf32>
    %8 = math.exp %7 : vector<8x256xf32>
    %cst_6 = arith.constant 1.000000e+00 : f32
    %9 = vector.broadcast %cst_6 : f32 to vector<8x256xf32>
    %10 = arith.addf %9, %8 : vector<8x256xf32>
    %11 = arith.divf %9, %10 : vector<8x256xf32>
    %c0_7 = arith.constant 0 : index
    %c0_8 = arith.constant 0 : index
    %c0_9 = arith.constant 0 : index
    %12 = vector.load %arg4[%c0_7, %c0_8, %c0_9] : memref<2x8x256xf32, #tpu.memory_space<vmem>>, vector<1x8x256xf32>
    %13 = vector.shape_cast %12 : vector<1x8x256xf32> to vector<8x256xf32>
    %14 = vector.shape_cast %11 : vector<8x256xf32> to vector<1x8x256xf32>
    tpu.vector_store %arg4[%c0_7, %c0_8, %c0_9], %14 {strides = array<i32>} : memref<2x8x256xf32, #tpu.memory_space<vmem>>, vector<1x8x256xf32>,
    %c1 = arith.constant 1 : index
    %c0_10 = arith.constant 0 : index
    %c0_11 = arith.constant 0 : index
    %15 = vector.load %arg3[%c1, %c0_10, %c0_11] : memref<2x21x256xf32, #tpu.memory_space<vmem>>, vector<1x21x256xf32>
    %16 = vector.shape_cast %15 : vector<1x21x256xf32> to vector<21x256xf32>
    %cst_12 = arith.constant dense<0.000000e+00> : vector<8x256xf32>
    %17 = tpu.matmul %0, %16, %cst_12 {dimension_numbers = #tpu.dot_dimension_numbers<[1], [0], [0], [1], [0, 0, 1, 1], [], []>} : vector<8x21xf32>, vector<21x256xf32>, vector<8x256xf32> -> vector<8x256xf32>
    %18 = vector.broadcast %1 : vector<8x1xf32> to vector<8x256xf32>
    %19 = arith.addf %17, %18 : vector<8x256xf32>
    %20 = arith.negf %19 : vector<8x256xf32>
    %21 = math.exp %20 : vector<8x256xf32>
    %cst_13 = arith.constant 1.000000e+00 : f32
    %22 = vector.broadcast %cst_13 : f32 to vector<8x256xf32>
    %23 = arith.addf %22, %21 : vector<8x256xf32>
    %24 = arith.divf %22, %23 : vector<8x256xf32>
    %c1_14 = arith.constant 1 : index
    %c0_15 = arith.constant 0 : index
    %c0_16 = arith.constant 0 : index
    %25 = vector.load %arg4[%c1_14, %c0_15, %c0_16] : memref<2x8x256xf32, #tpu.memory_space<vmem>>, vector<1x8x256xf32>
    %26 = vector.shape_cast %25 : vector<1x8x256xf32> to vector<8x256xf32>
    %27 = vector.shape_cast %24 : vector<8x256xf32> to vector<1x8x256xf32>
    tpu.vector_store %arg4[%c1_14, %c0_15, %c0_16], %27 {strides = array<i32>} : memref<2x8x256xf32, #tpu.memory_space<vmem>>, vector<1x8x256xf32>,
    return
  }
  func.func @transform_0(%arg0: i32) -> (i32, i32) {
    %c0_i32 = arith.constant 0 : i32
    %c0_i32_0 = arith.constant 0 : i32
    %c0_i32_1 = arith.constant 0 : i32
    return %c0_i32, %c0_i32_0 : i32, i32
  }
  func.func @transform_1(%arg0: i32) -> (i32, i32) {
    %c0_i32 = arith.constant 0 : i32
    %c0_i32_0 = arith.constant 0 : i32
    %c0_i32_1 = arith.constant 0 : i32
    return %c0_i32, %c0_i32_0 : i32, i32
  }
  func.func @transform_2(%arg0: i32) -> (i32, i32, i32) {
    %c0_i32 = arith.constant 0 : i32
    %c0_i32_0 = arith.constant 0 : i32
    %c0_i32_1 = arith.constant 0 : i32
    %c0_i32_2 = arith.constant 0 : i32
    return %c0_i32, %c0_i32_0, %c0_i32_1 : i32, i32, i32
  }
  func.func @transform_3(%arg0: i32) -> (i32, i32, i32) {
    %c0_i32 = arith.constant 0 : i32
    %c0_i32_0 = arith.constant 0 : i32
    %c0_i32_1 = arith.constant 0 : i32
    %c0_i32_2 = arith.constant 0 : i32
    return %c0_i32, %c0_i32_0, %c0_i32_1 : i32, i32, i32
  }
}

</mosaic_0001>

<bundles_post_ra>
// kernel: tpu_custom_call.1
= control target key start
LH: loop header
LB: loop body
LE: loop exit
PB: predicated region body
PF: predicated region fallthrough
CT: control target
= control target key end

     0   :  { %v309_v7 = vmov 0.0   ;;  %vm32_vm0 = vcmask 1044480   ;;  %v310_v13 = vmov 0   ;;  %s392_s0 = inlined_call_operand.vmem [shape: f32[8,21], index: 0, kind: input, shape index: {}]   ;;  %s393_s1 = inlined_call_operand.vmem [shape: f32[8,1], index: 1, kind: input, shape index: {}]   ;;  %s394_s2 = inlined_call_operand.vmem [shape: f32[2,21,256], index: 2, kind: input, shape index: {}]   ;;  %s395_s3 = inlined_call_operand.hbm [shape: f32[2,8,256], index: 3, kind: output, shape index: {}]  }
   0x1   :  { %v18_v0 = vld [vmem:[%s394_s2 + $0x8] sm:$0xff]  ;;  %v20_v1 = vld [vmem:[%s394_s2 + $0x18] sm:$0xff]  ;;  %v17_v5 = vld [vmem:[%s394_s2] sm:$0xff]  ;;  %103 = vmatprep.mubr.f32.mxu0 %v309_v7  ;;  %201 = vmatprep.mubr.f32.mxu1 %v309_v7 }
   0x2   :  { %v245_v2 = vld [vmem:[%s394_s2 + $0x38] sm:$0xff]  ;;  %v255_v3 = vpack.c.bf16 %v20_v1, %v18_v0  ;;  %v247_v4 = vld [vmem:[%s394_s2 + $0x48] sm:$0xff]  ;;  %v19_v6 = vld [vmem:[%s394_s2 + $0x10] sm:$0xff]  ;;  %268 = vset.pattern.permute.xlu0 %v310_v13 }
   0x3   :  { %v259_v8 = vpack.c.bf16 %v247_v4, %v245_v2  ;;  %v257_v9 = vpack.c.bf16 %v19_v6, %v17_v5  ;;  %v244_v10 = vld [vmem:[%s394_s2 + $0x30] sm:$0xff]  ;;  %v246_v11 = vld [vmem:[%s394_s2 + $0x40] sm:$0xff]  ;;  %v22_v12 = vld [vmem:[%s394_s2 + $0x28] sm:$0x1f] }
   0x4   :  { %256 = vmatprep.subr.bf16.mxu0 %v255_v3  ;;  %v261_v14 = vpack.c.bf16 %v246_v11, %v244_v10  ;;  %v249_v15 = vld [vmem:[%s394_s2 + $0x58] sm:$0x1f]  ;;  %v16_v16 = vld [vmem:[%s393_s1] sm:$0xff] }
   0x5   :  { %260 = vmatprep.subr.bf16.mxu1 %v259_v8  ;;  %258 = vmatpush1.bf16.msra.mxu0 %v257_v9 }
   0x6   :  { %8 = vsyncpa [#allocation3], 0  ;;  %262 = vmatpush1.bf16.msra.mxu1 %v261_v14  ;;  %239 = vmatprep.subr.msk.mxu0 %vm32_vm0, %v22_v12  ;;  %v21_v17 = vld [vmem:[%s394_s2 + $0x20] sm:$0x1f]  ;;  %v248_v18 = vld [vmem:[%s394_s2 + $0x50] sm:$0x1f] }
   0x7   :  { %250 = vmatprep.subr.msk.mxu1 %vm32_vm0, %v249_v15  ;;  %v15_v19 = vld [vmem:[%s392_s0] sm:$0xff]  ;;  %vm28_vm1 = vcmask 171008   ;;  %25 = vperm.xlu0 %268, %v16_v16   ;;  %s311_s0 = smov [#allocation2]  }
   0x8   :  { %s228_s1 = sshll.u32 %s311_s0, 4  ;;  %s229_s1 = int_to_ptr.vmem [resolvable:$true] %s228_s1 }
   0x9   :  { %240 = vmatpush1.msk.msra.mxu0 %vm32_vm0, %v21_v17  ;;  %s285_s2 = scalar_lea.vmem %s229_s1, 512  ;;  %p290_p1 = scmp.lt.s32.totalorder %s229_s1, %s229_s1 }
   0xa   :  { %251 = vmatpush1.msk.msra.mxu1 %vm32_vm0, %v248_v18  ;;  %241 = vmatmul.mubr.msk.f32.vlgmr.msra.gmra.mrb[0].mxu0 %vm28_vm1, %v15_v19  ;;  %p286_p0 = scmp.ne.s32.totalorder %s229_s1, %s285_s2  ;;  %p291_p2 = scmp.lt.s32.totalorder %s285_s2, %s285_s2 }
   0xb   :  { %252 = vmatmul.mubr.msk.f32.vlgmr.msra.gmra.mrb[0].mxu1 %vm28_vm1, %v15_v19 }
   0xc   :  { %p292_p3 = por %p291_p2, %p290_p1 }
   0xe   :  { %p293_p4 = pnand %p292_p3, %p286_p0 }
  0x86   :  { %v26_v20 = vpop.permute.xlu0 %25 }
  0xdd   :  { %v105_v21 = vpop.f32.mrb[0].mxu0 }
  0xde   :  { %v106_v22 = vadd.f32 %v105_v21, %v26_v20  ;;  %v203_v23 = vpop.f32.mrb[0].mxu1  ;;  %v107_v24 = vpop.f32.mrb[1].mxu0 }
  0xdf   :  { %v204_v25 = vadd.f32 %v203_v23, %v26_v20  ;;  %v108_v26 = vadd.f32 %v107_v24, %v26_v20  ;;  %v205_v27 = vpop.f32.mrb[1].mxu1 }
  0xe0   :  { %v242_v28 = vmul.f32 -1.442695, %v106_v22  ;;  %v206_v29 = vadd.f32 %v205_v27, %v26_v20 }
  0xe1   :  { %v253_v30 = vmul.f32 -1.442695, %v204_v25  ;;  %v243_v31 = vmul.f32 -1.442695, %v108_v26 }
  0xe2   :  { %269 = vpow2.f32 %v242_v28  ;;  %v254_v32 = vmul.f32 -1.442695, %v206_v29 }
  0xe3   :  { %271 = vpow2.f32 %v253_v30 }
  0xe4   :  { %273 = vpow2.f32 %v243_v31 }
  0xe5   :  { %275 = vpow2.f32 %v254_v32 }
  0xec   :  { %v270_v33 = vpop.eup %269 }
  0xed   :  { %v272_v34 = vpop.eup %271  ;;  %v116_v35 = vadd.f32 1.0, %v270_v33 }
  0xee   :  { %v274_v36 = vpop.eup %273  ;;  %v214_v37 = vadd.f32 1.0, %v272_v34 }
  0xef   :  { %v276_v38 = vpop.eup %275  ;;  %277 = vrcp.f32 %v116_v35  ;;  %v117_v39 = vadd.f32 1.0, %v274_v36 }
  0xf0   :  { %279 = vrcp.f32 %v214_v37  ;;  %v215_v40 = vadd.f32 1.0, %v276_v38 }
  0xf1   :  { %281 = vrcp.f32 %v117_v39 }
  0xf2   :  { %283 = vrcp.f32 %v215_v40 }
  0xf9   :  { %v278_v41 = vpop.eup %277 }
  0xfa   :  { %v280_v42 = vpop.eup %279  ;;  %122 = vst [vmem:[#allocation2] sm:$0xff] %v278_v41 }
  0xfb   :  { %v282_v43 = vpop.eup %281  ;;  %221 = vst [vmem:[#allocation2 + $0x10] sm:$0xff] %v280_v42 }
  0xfc   :  { %v284_v44 = vpop.eup %283  ;;  %123 = vst [vmem:[#allocation2 + $0x8] sm:$0xff] %v282_v43 }
  0xfd   :  { %222 = vst [vmem:[#allocation2 + $0x18] sm:$0xff] %v284_v44 }
  0xfe   :  { %296 = shalt.err (!%p293_p4)
}
  0xff   :  { %s297_s15 = scalar_lea.hbm %s395_s3, 512 }
 0x100   :  { %p298_p5 = scmp.ne.s32.totalorder %s395_s3, %s297_s15  ;;  %p301_p6 = scmp.lt.u32.totalorder %s297_s15, %s395_s3 }
 0x102   :  { %p303_p7 = pnand %p301_p6, %p298_p5 }
 0x104   :  { %306 = shalt.err (!%p303_p7)
}
 0x105   :  { %s312_s20 = smov 256   ;;  %s313_s21 = smov 16  }
 0x106   :  { %234 = dma.vmem_to_hbm [thread:$0]  %s229_s1, 512, %s395_s3, [#allocation3], %s312_s20, %s312_s20, %s313_s21  }
 0x107   :  { %307 = dma.done.wait [#allocation3], 512  }
 0x108   :  { %308 = vsyncadd [#allocation3], 4294966784 }
 0x109   :  { %238 = vsyncpa [#allocation3], 1 }

</bundles_post_ra>
